<compile_context>
chip_gen: v6e
topology: v6e:2x2x1
jax: 0.10.0
libtpu: 0.0.40
codegen_flags: <defaults>
</compile_context>

<pallas_src>
import jax
import jax.numpy as jnp
from jax import lax
from jax.experimental import pallas as pl
from jax.experimental.pallas import tpu as pltpu

embedding_size = 10
hidden_size = 8
input_size = 4
num_class = 4
num_layers = 2


def rnn_kernel(
    idx_ref,    # (B, S)    int32 token ids
    t0x_ref,    # (V, 2H)   [ emb @ Wih0^T + b0 | b1 ]  (embedding + biases folded)
    wblk_ref,   # (2H, 2H)  [[Whh0^T, Wih1^T], [0, Whh1^T]]
    b1pad_ref,  # (1, 2H)   [ 0 | b1 ]   (addend for the final wavefront stage)
    wfc_ref,    # (2H, C)   [ 0 ; fc_w^T ]  (h0 half zeroed)
    bfc_ref,    # (1, C)    fc bias
    out_ref,    # (B*S, C)  logits, batch-major flat (matches torch .view(-1, C))
    g_all_ref,  # scratch   (B, S, 2H)  joint states [h0_{t+1} | h1_t]
):
    B, S = idx_ref.shape
    V, H2 = t0x_ref.shape
    H = H2 // 2

    # ---- prologue (hoisted out of the recurrence) ---------------------------
    # Embedding lookup + layer-0 input projection + all biases, as one one-hot
    # matmul against the precomputed extended token table.
    idx = idx_ref[...]                                             # (B, S)
    iota_v = lax.broadcasted_iota(jnp.int32, (B, S, V), 2)
    onehot = (iota_v == idx[:, :, None]).astype(jnp.float32)      # (B, S, V)
    xext = jnp.dot(
        onehot.reshape(B * S, V), t0x_ref[...],
        preferred_element_type=jnp.float32,
    ).reshape(B, S, H2)                                            # [x0_t | b1] per (b, t)

    wblk = wblk_ref[...]
    b1pad = b1pad_ref[...]                                         # (1, 2H) = [0 | b1]
    # mask selecting the h0 half of the joint state (lanes < H)
    mask0 = (lax.broadcasted_iota(jnp.int32, (B, H2), 1) < H).astype(jnp.float32)

    # ---- serial wavefront recurrence ----------------------------------------
    # Stage 0: g = [h0_0 | h1_{-1}=0]   (initial hiddens are zeros)
    g = jnp.tanh(xext[:, 0, :]) * mask0
    # Stages t = 1..S-1: g = [h0_t | h1_{t-1}]   -- one matmul + one tanh each
    for t in range(1, S):
        g = jnp.tanh(
            jnp.dot(g, wblk, preferred_element_type=jnp.float32) + xext[:, t, :]
        )
        g_all_ref[:, t - 1, :] = g
    # Final stage: second half yields h1_{S-1} (first half is unused)
    g = jnp.tanh(jnp.dot(g, wblk, preferred_element_type=jnp.float32) + b1pad)
    g_all_ref[:, S - 1, :] = g

    # ---- epilogue: one FC matmul + one contiguous output store --------------
    # wfc's h0-half rows are zero, so only the h1 half contributes.
    out_ref[...] = (
        jnp.dot(g_all_ref[...].reshape(B * S, H2), wfc_ref[...],
                preferred_element_type=jnp.float32)
        + bfc_ref[...]
    )


def prepare_kernel_params(params):
    """One-time param preparation (transposes / folding / block assembly)."""
    H, C, V = hidden_size, num_class, input_size
    f32 = jnp.float32
    b0 = params["b_ih_l0"] + params["b_hh_l0"]
    b1 = params["b_ih_l1"] + params["b_hh_l1"]

    t0 = params["emb"] @ params["w_ih_l0"].T + b0                      # (V, H)
    t0x = jnp.concatenate([t0, jnp.broadcast_to(b1, (V, H))], axis=1)  # (V, 2H)

    top = jnp.concatenate([params["w_hh_l0"].T, params["w_ih_l1"].T], axis=1)   # (H, 2H)
    bot = jnp.concatenate([jnp.zeros((H, H), f32), params["w_hh_l1"].T], axis=1)
    wblk = jnp.concatenate([top, bot], axis=0)                                  # (2H, 2H)

    b1pad = jnp.concatenate([jnp.zeros((1, H), f32), b1.reshape(1, H)], axis=1)  # (1, 2H)
    wfc = jnp.concatenate([jnp.zeros((H, C), f32), params["fc_w"].T], axis=0)    # (2H, C)
    bfc = params["fc_b"].reshape(1, C)

    return {
        "t0x": t0x.astype(f32),
        "wblk": wblk.astype(f32),
        "b1pad": b1pad.astype(f32),
        "wfc": wfc.astype(f32),
        "bfc": bfc.astype(f32),
    }


def rnn_forward(x_idx, kp):
    """x_idx: int32 (batch, seq) token indices in [0, input_size)."""
    B, S = x_idx.shape
    H2, C = 2 * hidden_size, num_class
    # Single launch, no grid: all operands fit in VMEM as whole-array blocks.
    return pl.pallas_call(
        rnn_kernel,
        out_shape=jax.ShapeDtypeStruct((B * S, C), jnp.float32),
        scratch_shapes=[pltpu.VMEM((B, S, H2), jnp.float32)],
    )(
        x_idx.astype(jnp.int32),
        kp["t0x"], kp["wblk"], kp["b1pad"], kp["wfc"], kp["bfc"],
    )


def init_params(key):
    E, H, C, V = embedding_size, hidden_size, num_class, input_size
    ks = jax.random.split(key, 12)
    u = lambda k, shape, bound: jax.random.uniform(
        k, shape, jnp.float32, minval=-bound, maxval=bound
    )
    s_h = 1.0 / jnp.sqrt(H)
    return {
        "emb": jax.random.normal(ks[0], (V, E), jnp.float32),
        "w_ih_l0": u(ks[1], (H, E), s_h),
        "w_hh_l0": u(ks[2], (H, H), s_h),
        "b_ih_l0": u(ks[3], (H,), s_h),
        "b_hh_l0": u(ks[4], (H,), s_h),
        "w_ih_l1": u(ks[5], (H, H), s_h),
        "w_hh_l1": u(ks[6], (H, H), s_h),
        "b_ih_l1": u(ks[7], (H,), s_h),
        "b_hh_l1": u(ks[8], (H,), s_h),
        "fc_w": u(ks[9], (C, H), s_h),
        "fc_b": u(ks[10], (C,), s_h),
    }


def reference_forward(x_idx, params):
    """Pure-JAX reference of the PyTorch forward (for correctness check)."""
    B, S = x_idx.shape
    x = jnp.take(params["emb"], x_idx, axis=0)  # (B, S, E)
    h0 = jnp.zeros((B, hidden_size), jnp.float32)
    h1 = jnp.zeros((B, hidden_size), jnp.float32)
    outs = []
    for t in range(S):
        xt = x[:, t, :]
        h0 = jnp.tanh(
            xt @ params["w_ih_l0"].T + params["b_ih_l0"]
            + h0 @ params["w_hh_l0"].T + params["b_hh_l0"]
        )
        h1 = jnp.tanh(
            h0 @ params["w_ih_l1"].T + params["b_ih_l1"]
            + h1 @ params["w_hh_l1"].T + params["b_hh_l1"]
        )
        outs.append(h1 @ params["fc_w"].T + params["fc_b"])
    y = jnp.stack(outs, axis=1)  # (B, S, C)
    return y.reshape(-1, num_class)


if __name__ == "__main__":
    key = jax.random.PRNGKey(0)
    pkey, xkey = jax.random.split(key)
    params = init_params(pkey)
    kparams = prepare_kernel_params(params)   # one-time prep, off the hot path

    batch, seq = 2, 8
    x_idx = jax.random.randint(xkey, (batch, seq), 0, input_size, dtype=jnp.int32)

    fwd = jax.jit(rnn_forward)
    out = fwd(x_idx, kparams)
    out = jax.block_until_ready(out)

    ref = reference_forward(x_idx, params)
    assert out.shape == (batch * seq, num_class), out.shape
    assert jnp.allclose(out, ref, atol=1e-5, rtol=1e-5), "mismatch vs reference"

    print("KERNEL_OK")
</pallas_src>

<mosaic_0001>
module attributes {stable_mosaic.version = 11 : i64} {
  func.func @rnn_kernel(%arg0: memref<2x8xi32, #tpu.memory_space<vmem>>, %arg1: memref<4x16xf32, #tpu.memory_space<vmem>>, %arg2: memref<16x16xf32, #tpu.memory_space<vmem>>, %arg3: memref<1x16xf32, #tpu.memory_space<vmem>>, %arg4: memref<16x4xf32, #tpu.memory_space<vmem>>, %arg5: memref<1x4xf32, #tpu.memory_space<vmem>>, %arg6: memref<16x4xf32, #tpu.memory_space<vmem>>, %arg7: memref<2x8x16xf32, #tpu.memory_space<vmem>>) attributes {dimension_semantics = [], scalar_prefetch = 0 : i64, scratch_operands = 1 : i64, tpu.core_type = #tpu.core_type<tc>} {
    %c0 = arith.constant 0 : index
    %c0_0 = arith.constant 0 : index
    %0 = vector.load %arg0[%c0, %c0_0] : memref<2x8xi32, #tpu.memory_space<vmem>>, vector<2x8xi32>
    %1 = tpu.iota {dimensions = array<i32: 2>} : vector<2x8x4xi32>
    %2 = vector.shape_cast %0 : vector<2x8xi32> to vector<2x8x1xi32>
    %3 = vector.broadcast %2 : vector<2x8x1xi32> to vector<2x8x4xi32>
    %4 = arith.cmpi eq, %1, %3 : vector<2x8x4xi32>
    %5 = arith.extui %4 : vector<2x8x4xi1> to vector<2x8x4xi32>
    %6 = arith.sitofp %5 : vector<2x8x4xi32> to vector<2x8x4xf32>
    %7 = vector.shape_cast %6 : vector<2x8x4xf32> to vector<16x4xf32>
    %c0_1 = arith.constant 0 : index
    %c0_2 = arith.constant 0 : index
    %8 = vector.load %arg1[%c0_1, %c0_2] : memref<4x16xf32, #tpu.memory_space<vmem>>, vector<4x16xf32>
    %cst = arith.constant dense<0.000000e+00> : vector<16x16xf32>
    %9 = tpu.matmul %7, %8, %cst {dimension_numbers = #tpu.dot_dimension_numbers<[1], [0], [0], [1], [0, 0, 1, 1], [], []>} : vector<16x4xf32>, vector<4x16xf32>, vector<16x16xf32> -> vector<16x16xf32>
    %10 = vector.shape_cast %9 : vector<16x16xf32> to vector<2x8x16xf32>
    %c0_3 = arith.constant 0 : index
    %c0_4 = arith.constant 0 : index
    %11 = vector.load %arg2[%c0_3, %c0_4] : memref<16x16xf32, #tpu.memory_space<vmem>>, vector<16x16xf32>
    %c0_5 = arith.constant 0 : index
    %c0_6 = arith.constant 0 : index
    %12 = vector.load %arg3[%c0_5, %c0_6] : memref<1x16xf32, #tpu.memory_space<vmem>>, vector<1x16xf32>
    %13 = tpu.iota {dimensions = array<i32: 1>} : vector<2x16xi32>
    %c8_i32 = arith.constant 8 : i32
    %14 = vector.broadcast %c8_i32 : i32 to vector<2x16xi32>
    %15 = arith.cmpi slt, %13, %14 : vector<2x16xi32>
    %16 = arith.extui %15 : vector<2x16xi1> to vector<2x16xi32>
    %17 = arith.sitofp %16 : vector<2x16xi32> to vector<2x16xf32>
    %18 = vector.extract_strided_slice %10 {offsets = [0, 0, 0], sizes = [2, 1, 16], strides = [1, 1, 1]} : vector<2x8x16xf32> to vector<2x1x16xf32>
    %19 = vector.shape_cast %18 : vector<2x1x16xf32> to vector<2x16xf32>
    %20 = math.tanh %19 : vector<2x16xf32>
    %21 = arith.mulf %20, %17 : vector<2x16xf32>
    %cst_7 = arith.constant dense<0.000000e+00> : vector<2x16xf32>
    %22 = tpu.matmul %21, %11, %cst_7 {dimension_numbers = #tpu.dot_dimension_numbers<[1], [0], [0], [1], [0, 0, 1, 1], [], []>} : vector<2x16xf32>, vector<16x16xf32>, vector<2x16xf32> -> vector<2x16xf32>
    %23 = vector.extract_strided_slice %10 {offsets = [0, 1, 0], sizes = [2, 1, 16], strides = [1, 1, 1]} : vector<2x8x16xf32> to vector<2x1x16xf32>
    %24 = vector.shape_cast %23 : vector<2x1x16xf32> to vector<2x16xf32>
    %25 = arith.addf %22, %24 : vector<2x16xf32>
    %26 = math.tanh %25 : vector<2x16xf32>
    %c0_8 = arith.constant 0 : index
    %c0_9 = arith.constant 0 : index
    %c0_10 = arith.constant 0 : index
    %27 = vector.load %arg7[%c0_8, %c0_9, %c0_10] : memref<2x8x16xf32, #tpu.memory_space<vmem>>, vector<2x1x16xf32>
    %28 = vector.shape_cast %27 : vector<2x1x16xf32> to vector<2x16xf32>
    %29 = vector.shape_cast %26 : vector<2x16xf32> to vector<2x1x16xf32>
    tpu.vector_store %arg7[%c0_8, %c0_9, %c0_10], %29 {strides = array<i32>} : memref<2x8x16xf32, #tpu.memory_space<vmem>>, vector<2x1x16xf32>,
    %cst_11 = arith.constant dense<0.000000e+00> : vector<2x16xf32>
    %30 = tpu.matmul %26, %11, %cst_11 {dimension_numbers = #tpu.dot_dimension_numbers<[1], [0], [0], [1], [0, 0, 1, 1], [], []>} : vector<2x16xf32>, vector<16x16xf32>, vector<2x16xf32> -> vector<2x16xf32>
    %31 = vector.extract_strided_slice %10 {offsets = [0, 2, 0], sizes = [2, 1, 16], strides = [1, 1, 1]} : vector<2x8x16xf32> to vector<2x1x16xf32>
    %32 = vector.shape_cast %31 : vector<2x1x16xf32> to vector<2x16xf32>
    %33 = arith.addf %30, %32 : vector<2x16xf32>
    %34 = math.tanh %33 : vector<2x16xf32>
    %c0_12 = arith.constant 0 : index
    %c1 = arith.constant 1 : index
    %c0_13 = arith.constant 0 : index
    %35 = vector.load %arg7[%c0_12, %c1, %c0_13] : memref<2x8x16xf32, #tpu.memory_space<vmem>>, vector<2x1x16xf32>
    %36 = vector.shape_cast %35 : vector<2x1x16xf32> to vector<2x16xf32>
    %37 = vector.shape_cast %34 : vector<2x16xf32> to vector<2x1x16xf32>
    tpu.vector_store %arg7[%c0_12, %c1, %c0_13], %37 {strides = array<i32>} : memref<2x8x16xf32, #tpu.memory_space<vmem>>, vector<2x1x16xf32>,
    %cst_14 = arith.constant dense<0.000000e+00> : vector<2x16xf32>
    %38 = tpu.matmul %34, %11, %cst_14 {dimension_numbers = #tpu.dot_dimension_numbers<[1], [0], [0], [1], [0, 0, 1, 1], [], []>} : vector<2x16xf32>, vector<16x16xf32>, vector<2x16xf32> -> vector<2x16xf32>
    %39 = vector.extract_strided_slice %10 {offsets = [0, 3, 0], sizes = [2, 1, 16], strides = [1, 1, 1]} : vector<2x8x16xf32> to vector<2x1x16xf32>
    %40 = vector.shape_cast %39 : vector<2x1x16xf32> to vector<2x16xf32>
    %41 = arith.addf %38, %40 : vector<2x16xf32>
    %42 = math.tanh %41 : vector<2x16xf32>
    %c0_15 = arith.constant 0 : index
    %c2 = arith.constant 2 : index
    %c0_16 = arith.constant 0 : index
    %43 = vector.load %arg7[%c0_15, %c2, %c0_16] : memref<2x8x16xf32, #tpu.memory_space<vmem>>, vector<2x1x16xf32>
    %44 = vector.shape_cast %43 : vector<2x1x16xf32> to vector<2x16xf32>
    %45 = vector.shape_cast %42 : vector<2x16xf32> to vector<2x1x16xf32>
    tpu.vector_store %arg7[%c0_15, %c2, %c0_16], %45 {strides = array<i32>} : memref<2x8x16xf32, #tpu.memory_space<vmem>>, vector<2x1x16xf32>,
    %cst_17 = arith.constant dense<0.000000e+00> : vector<2x16xf32>
    %46 = tpu.matmul %42, %11, %cst_17 {dimension_numbers = #tpu.dot_dimension_numbers<[1], [0], [0], [1], [0, 0, 1, 1], [], []>} : vector<2x16xf32>, vector<16x16xf32>, vector<2x16xf32> -> vector<2x16xf32>
    %47 = vector.extract_strided_slice %10 {offsets = [0, 4, 0], sizes = [2, 1, 16], strides = [1, 1, 1]} : vector<2x8x16xf32> to vector<2x1x16xf32>
    %48 = vector.shape_cast %47 : vector<2x1x16xf32> to vector<2x16xf32>
    %49 = arith.addf %46, %48 : vector<2x16xf32>
    %50 = math.tanh %49 : vector<2x16xf32>
    %c0_18 = arith.constant 0 : index
    %c3 = arith.constant 3 : index
    %c0_19 = arith.constant 0 : index
    %51 = vector.load %arg7[%c0_18, %c3, %c0_19] : memref<2x8x16xf32, #tpu.memory_space<vmem>>, vector<2x1x16xf32>
    %52 = vector.shape_cast %51 : vector<2x1x16xf32> to vector<2x16xf32>
    %53 = vector.shape_cast %50 : vector<2x16xf32> to vector<2x1x16xf32>
    tpu.vector_store %arg7[%c0_18, %c3, %c0_19], %53 {strides = array<i32>} : memref<2x8x16xf32, #tpu.memory_space<vmem>>, vector<2x1x16xf32>,
    %cst_20 = arith.constant dense<0.000000e+00> : vector<2x16xf32>
    %54 = tpu.matmul %50, %11, %cst_20 {dimension_numbers = #tpu.dot_dimension_numbers<[1], [0], [0], [1], [0, 0, 1, 1], [], []>} : vector<2x16xf32>, vector<16x16xf32>, vector<2x16xf32> -> vector<2x16xf32>
    %55 = vector.extract_strided_slice %10 {offsets = [0, 5, 0], sizes = [2, 1, 16], strides = [1, 1, 1]} : vector<2x8x16xf32> to vector<2x1x16xf32>
    %56 = vector.shape_cast %55 : vector<2x1x16xf32> to vector<2x16xf32>
    %57 = arith.addf %54, %56 : vector<2x16xf32>
    %58 = math.tanh %57 : vector<2x16xf32>
    %c0_21 = arith.constant 0 : index
    %c4 = arith.constant 4 : index
    %c0_22 = arith.constant 0 : index
    %59 = vector.load %arg7[%c0_21, %c4, %c0_22] : memref<2x8x16xf32, #tpu.memory_space<vmem>>, vector<2x1x16xf32>
    %60 = vector.shape_cast %59 : vector<2x1x16xf32> to vector<2x16xf32>
    %61 = vector.shape_cast %58 : vector<2x16xf32> to vector<2x1x16xf32>
    tpu.vector_store %arg7[%c0_21, %c4, %c0_22], %61 {strides = array<i32>} : memref<2x8x16xf32, #tpu.memory_space<vmem>>, vector<2x1x16xf32>,
    %cst_23 = arith.constant dense<0.000000e+00> : vector<2x16xf32>
    %62 = tpu.matmul %58, %11, %cst_23 {dimension_numbers = #tpu.dot_dimension_numbers<[1], [0], [0], [1], [0, 0, 1, 1], [], []>} : vector<2x16xf32>, vector<16x16xf32>, vector<2x16xf32> -> vector<2x16xf32>
    %63 = vector.extract_strided_slice %10 {offsets = [0, 6, 0], sizes = [2, 1, 16], strides = [1, 1, 1]} : vector<2x8x16xf32> to vector<2x1x16xf32>
    %64 = vector.shape_cast %63 : vector<2x1x16xf32> to vector<2x16xf32>
    %65 = arith.addf %62, %64 : vector<2x16xf32>
    %66 = math.tanh %65 : vector<2x16xf32>
    %c0_24 = arith.constant 0 : index
    %c5 = arith.constant 5 : index
    %c0_25 = arith.constant 0 : index
    %67 = vector.load %arg7[%c0_24, %c5, %c0_25] : memref<2x8x16xf32, #tpu.memory_space<vmem>>, vector<2x1x16xf32>
    %68 = vector.shape_cast %67 : vector<2x1x16xf32> to vector<2x16xf32>
    %69 = vector.shape_cast %66 : vector<2x16xf32> to vector<2x1x16xf32>
    tpu.vector_store %arg7[%c0_24, %c5, %c0_25], %69 {strides = array<i32>} : memref<2x8x16xf32, #tpu.memory_space<vmem>>, vector<2x1x16xf32>,
    %cst_26 = arith.constant dense<0.000000e+00> : vector<2x16xf32>
    %70 = tpu.matmul %66, %11, %cst_26 {dimension_numbers = #tpu.dot_dimension_numbers<[1], [0], [0], [1], [0, 0, 1, 1], [], []>} : vector<2x16xf32>, vector<16x16xf32>, vector<2x16xf32> -> vector<2x16xf32>
    %71 = vector.extract_strided_slice %10 {offsets = [0, 7, 0], sizes = [2, 1, 16], strides = [1, 1, 1]} : vector<2x8x16xf32> to vector<2x1x16xf32>
    %72 = vector.shape_cast %71 : vector<2x1x16xf32> to vector<2x16xf32>
    %73 = arith.addf %70, %72 : vector<2x16xf32>
    %74 = math.tanh %73 : vector<2x16xf32>
    %c0_27 = arith.constant 0 : index
    %c6 = arith.constant 6 : index
    %c0_28 = arith.constant 0 : index
    %75 = vector.load %arg7[%c0_27, %c6, %c0_28] : memref<2x8x16xf32, #tpu.memory_space<vmem>>, vector<2x1x16xf32>
    %76 = vector.shape_cast %75 : vector<2x1x16xf32> to vector<2x16xf32>
    %77 = vector.shape_cast %74 : vector<2x16xf32> to vector<2x1x16xf32>
    tpu.vector_store %arg7[%c0_27, %c6, %c0_28], %77 {strides = array<i32>} : memref<2x8x16xf32, #tpu.memory_space<vmem>>, vector<2x1x16xf32>,
    %cst_29 = arith.constant dense<0.000000e+00> : vector<2x16xf32>
    %78 = tpu.matmul %74, %11, %cst_29 {dimension_numbers = #tpu.dot_dimension_numbers<[1], [0], [0], [1], [0, 0, 1, 1], [], []>} : vector<2x16xf32>, vector<16x16xf32>, vector<2x16xf32> -> vector<2x16xf32>
    %79 = vector.broadcast %12 : vector<1x16xf32> to vector<2x16xf32>
    %80 = arith.addf %78, %79 : vector<2x16xf32>
    %81 = math.tanh %80 : vector<2x16xf32>
    %c0_30 = arith.constant 0 : index
    %c7 = arith.constant 7 : index
    %c0_31 = arith.constant 0 : index
    %82 = vector.load %arg7[%c0_30, %c7, %c0_31] : memref<2x8x16xf32, #tpu.memory_space<vmem>>, vector<2x1x16xf32>
    %83 = vector.shape_cast %82 : vector<2x1x16xf32> to vector<2x16xf32>
    %84 = vector.shape_cast %81 : vector<2x16xf32> to vector<2x1x16xf32>
    tpu.vector_store %arg7[%c0_30, %c7, %c0_31], %84 {strides = array<i32>} : memref<2x8x16xf32, #tpu.memory_space<vmem>>, vector<2x1x16xf32>,
    %c0_32 = arith.constant 0 : index
    %c0_33 = arith.constant 0 : index
    %c0_34 = arith.constant 0 : index
    %85 = vector.load %arg7[%c0_32, %c0_33, %c0_34] : memref<2x8x16xf32, #tpu.memory_space<vmem>>, vector<2x8x16xf32>
    %86 = vector.shape_cast %85 : vector<2x8x16xf32> to vector<16x16xf32>
    %c0_35 = arith.constant 0 : index
    %c0_36 = arith.constant 0 : index
    %87 = vector.load %arg4[%c0_35, %c0_36] : memref<16x4xf32, #tpu.memory_space<vmem>>, vector<16x4xf32>
    %cst_37 = arith.constant dense<0.000000e+00> : vector<16x4xf32>
    %88 = tpu.matmul %86, %87, %cst_37 {dimension_numbers = #tpu.dot_dimension_numbers<[1], [0], [0], [1], [0, 0, 1, 1], [], []>} : vector<16x16xf32>, vector<16x4xf32>, vector<16x4xf32> -> vector<16x4xf32>
    %c0_38 = arith.constant 0 : index
    %c0_39 = arith.constant 0 : index
    %89 = vector.load %arg5[%c0_38, %c0_39] : memref<1x4xf32, #tpu.memory_space<vmem>>, vector<1x4xf32>
    %90 = vector.broadcast %89 : vector<1x4xf32> to vector<16x4xf32>
    %91 = arith.addf %88, %90 : vector<16x4xf32>
    %c0_40 = arith.constant 0 : index
    %c0_41 = arith.constant 0 : index
    %92 = vector.load %arg6[%c0_40, %c0_41] : memref<16x4xf32, #tpu.memory_space<vmem>>, vector<16x4xf32>
    tpu.vector_store %arg6[%c0_40, %c0_41], %91 {strides = array<i32>} : memref<16x4xf32, #tpu.memory_space<vmem>>, vector<16x4xf32>,
    return
  }
}

</mosaic_0001>

<bundles_post_ra>
// kernel: rnn_forward.1
= control target key start
LH: loop header
LB: loop body
LE: loop exit
PB: predicated region body
PF: predicated region fallthrough
CT: control target
= control target key end

     0   :  { %v24_v0 = vlaneseq  ;;  %vm54_vm0 = vcmask 1043456   ;;  %v1223_v2 = vmov 0.0   ;;  %vm47_vm1 = vcmask 31744   ;;  %s1427_s0 = inlined_call_operand.vmem [shape: s32[2,8], index: 0, kind: input, shape index: {}]   ;;  %s1428_s1 = inlined_call_operand.vmem [shape: f32[4,16], index: 1, kind: input, shape index: {}]   ;;  %s1429_s2 = inlined_call_operand.vmem [shape: f32[16,16], index: 2, kind: input, shape index: {}]   ;;  %s1430_s4 = inlined_call_operand.vmem [shape: f32[16,4], index: 4, kind: input, shape index: {}]   ;;  %s1431_s3 = inlined_call_operand.vmem [shape: f32[1,16], index: 3, kind: input, shape index: {}]   ;;  %s1432_s5 = inlined_call_operand.vmem [shape: f32[1,4], index: 5, kind: input, shape index: {}]   ;;  %s1433_s6 = inlined_call_operand.vmem [shape: f32[16,4], index: 6, kind: output, shape index: {}]  }
   0x1   :  { %v46_v1 = vld [vmem:[%s1428_s1] sm:$0xf]  ;;  %1137 = vmatprep.subr.mxu1 %v1223_v2  ;;  %v1280_v14 = vld [vmem:[%s1429_s2 + $0x8] sm:$0xff]  ;;  %vm1224_vm4 = vmmov 0   ;;  %vm146_vm5 = vcmask 1041409   ;;  %vm153_vm7 = vcmask 130048  }
   0x2   :  { %v1265_v3 = vshrl.u32 %v24_v0, 7  ;;  %1132 = vmatprep.subr.msk.mxu0 %vm54_vm0, %v46_v1  ;;  %v23_v4 = vld [vmem:[%s1427_s0] sm:$0x3]  ;;  %v25_v9 = vand.u32 127, %v24_v0  ;;  %1141 = vmatprep.mubr.msk.f32.mxu1 %vm1224_vm4, %v1223_v2  ;;  %v1225_v48 = vmov 1966171168  }
   0x3   :  { %1133 = vmatpush3.msk.msra.mxu0 %vm54_vm0, %v46_v1  ;;  %v1285_v15 = vld [vmem:[%s1429_s2] sm:$0xff]  ;;  %1138 = vmatpush3.msra.mxu1 %v1280_v14  ;;  %v229_v49 = vunpack.c.l.s4 %v1225_v48  ;;  %vm252_vm8 = vcmask 122880  }
   0x4   :  { %v28_v5 = vsub.s32 0, %v1265_v3  ;;  %v35_v6 = vsub.s32 1, %v1265_v3  ;;  %1144 = vmatprep.subr.mxu0 %v1223_v2  ;;  %1139 = vmatprep.subr.mxu1 %v1223_v2  ;;  %vm136_vm6 = vcmp.lt.s32.totalorder %v25_v9, 8 }
   0x5   :  { %1140 = vmatpush3.msra.mxu1 %v1285_v15  ;;  %v1088_v38 = vsel %vm136_vm6, 1.0, %v1223_v2  ;;  %v230_v50 = vunpack.c.0.s8 %v229_v49 }
   0x6   :  { %v29_v7 = vrot.slane %v23_v4, %v28_v5  ;;  %v36_v8 = vrot.slane %v23_v4, %v35_v6  ;;  %1151 = vmatprep.subr.mxu1 %v1223_v2 }
   0x7   :  { %v1324_v51 = vsub.s32 %v230_v50, %v1265_v3 }
   0x8   :  { %31 = vbcast.lane.b32.xlu0 %v29_v7, 256 }
   0xc   :  { %38 = vbcast.lane.b32.xlu0 %v36_v8, 256 }
  0x7a   :  { %v32_v10 = vpop.permute.xlu0 %31 }
  0x7b   :  { %vm40_vm2 = vcmp.eq.s32.totalorder %v25_v9, %v32_v10 }
  0x7c   :  { %v1083_v11 = vsel %vm40_vm2, 1.0, %v1223_v2 }
  0x7d   :  { %1134 = vmatprep.mubr.msk.f32.mxu0 %vm47_vm1, %v1083_v11 }
  0x7e   :  { %v39_v12 = vpop.permute.xlu0 %38 }
  0x7f   :  { %vm41_vm3 = vcmp.eq.s32.totalorder %v25_v9, %v39_v12 }
  0x80   :  { %v1084_v13 = vsel %vm41_vm3, 1.0, %v1223_v2 }
  0x81   :  { %1135 = vmatmul.mubr.msk.f32.vlgmr.msra.gmra.mxu0 %vm47_vm1, %v1084_v13 }
  0x82   :  { %1148 = vmatprep.mubr.msk.f32.mxu0 %vm1224_vm4, %v1223_v2  ;;  %1145 = vmatpush3.msra.mxu0 %v1280_v14 }
  0x83   :  { %1146 = vmatprep.subr.mxu0 %v1223_v2 }
  0x84   :  { %1147 = vmatpush3.msra.mxu0 %v1285_v15 }
  0x85   :  { %1158 = vmatprep.subr.mxu0 %v1223_v2 }
 0x141   :  { %v1136_v16 = vpop.f32.mrf.mxu0 }
 0x142   :  { %1203 = vtanh.f32 %v1136_v16  ;;  %v256_v17 = vrot.slane %v1136_v16, 1  ;;  %v360_v18 = vrot.slane %v1136_v16, 2  ;;  %v464_v20 = vrot.slane %v1136_v16, 3 }
 0x143   :  { %v124_v19 = vpop.f32.mrf.mxu0  ;;  %v568_v21 = vrot.slane %v1136_v16, 4  ;;  %v672_v22 = vrot.slane %v1136_v16, 5  ;;  %v776_v23 = vrot.slane %v1136_v16, 6 }
 0x144   :  { %1205 = vtanh.f32 %v124_v19  ;;  %v150_v24 = vrot.slane %v124_v19, 1  ;;  %v255_v25 = vrot.slane %v124_v19, 2  ;;  %v359_v26 = vrot.slane %v124_v19, 3 }
 0x145   :  { %v463_v27 = vrot.slane %v124_v19, 4  ;;  %v567_v28 = vrot.slane %v124_v19, 5  ;;  %v671_v29 = vrot.slane %v124_v19, 6  ;;  %v775_v30 = vrot.slane %v124_v19, 7 }
 0x146   :  { %v151_v31 = vsel %vm146_vm5, %v1136_v16, %v150_v24  ;;  %v257_v32 = vsel %vm146_vm5, %v256_v17, %v255_v25  ;;  %v361_v33 = vsel %vm146_vm5, %v360_v18, %v359_v26 }
 0x147   :  { %v1303_v34 = vsel %vm146_vm5, %v464_v20, %v463_v27  ;;  %v1306_v35 = vsel %vm146_vm5, %v568_v21, %v567_v28  ;;  %v1309_v36 = vsel %vm146_vm5, %v672_v22, %v671_v29  ;;  %v1312_v37 = vsel %vm146_vm5, %v776_v23, %v775_v30 }
 0x14f   :  { %v1204_v39 = vpop.eup %1203 }
 0x150   :  { %v142_v40 = vmul.f32 %v1204_v39, %v1088_v38 }
 0x151   :  { %v1206_v41 = vpop.eup %1205 }
 0x152   :  { %v141_v42 = vmul.f32 %v1206_v41, %v1088_v38  ;;  %v145_v43 = vrot.slane %v142_v40, 7 }
 0x154   :  { %v147_v44 = vsel %vm146_vm5, %v145_v43, %v141_v42  ;;  %v987_v42 = vld [vmem:[%s1430_s4] sm:$0xff] }
 0x155   :  { %1142 = vmatmul.mubr.msk.f32.vlgmr.msra.gmra.mxu1 %vm153_vm7, %v147_v44  ;;  %v1096_v43 = vld [vmem:[%s1431_s3] ss:$0 sm:$0xff] }
 0x156   :  { %1152 = vmatpush3.msra.mxu1 %v1280_v14  ;;  %1155 = vmatprep.mubr.msk.f32.mxu1 %vm1224_vm4, %v1223_v2 }
 0x157   :  { %1153 = vmatprep.subr.mxu1 %v1223_v2 }
 0x158   :  { %1154 = vmatpush3.msra.mxu1 %v1285_v15 }
 0x159   :  { %1165 = vmatprep.subr.mxu1 %v1223_v2 }
 0x215   :  { %v222_v45 = vpop.f32.mrf.mxu1 }
 0x216   :  { %v223_v46 = vadd.f32 %v222_v45, %v151_v31 }
 0x217   :  { %v1143_v47 = vpop.f32.mrf.mxu1 }
 0x218   :  { %1207 = vtanh.f32 %v223_v46 }
 0x225   :  { %v1208_v52 = vpop.eup %1207 }
 0x226   :  { %v234_v53 = vrot.slane %v1208_v52, %v1324_v51  ;;  %1149 = vmatmul.mubr.msk.f32.vlgmr.msra.gmra.mxu0 %vm153_vm7, %v1208_v52 }
 0x227   :  { %1159 = vmatpush3.msra.mxu0 %v1280_v14  ;;  %1162 = vmatprep.mubr.msk.f32.mxu0 %vm1224_vm4, %v1223_v2 }
 0x228   :  { %v235_v54 = vcombine.high %v234_v53, %v234_v53  ;;  %v242_v55 = vrot.slane %v234_v53, %v1324_v51  ;;  %1160 = vmatprep.subr.mxu0 %v1223_v2 }
 0x229   :  { %1161 = vmatpush3.msra.mxu0 %v1285_v15 }
 0x22a   :  { %v249_v56 = vrot.slane %v235_v54, %v1324_v51  ;;  %253 = vst.msk [vmem:[#allocation2] sm:$0x1] %vm252_vm8, %v242_v55  ;;  %1172 = vmatprep.subr.mxu0 %v1223_v2  ;;  %v1098_v55 = vld [vmem:[%s1432_s5] ss:$0 sm:$0xff] }
 0x22c   :  { %254 = vst.msk [vmem:[#allocation2 + $0x8] sm:$0x1] %vm252_vm8, %v249_v56 }
 0x2e6   :  { %v327_v57 = vpop.f32.mrf.mxu0 }
 0x2e7   :  { %v328_v58 = vadd.f32 %v327_v57, %v257_v32 }
 0x2e8   :  { %v1150_v59 = vpop.f32.mrf.mxu0 }
 0x2e9   :  { %1209 = vtanh.f32 %v328_v58 }
 0x2f6   :  { %v1210_v60 = vpop.eup %1209 }
 0x2f7   :  { %v339_v61 = vrot.slane %v1210_v60, %v1324_v51  ;;  %1156 = vmatmul.mubr.msk.f32.vlgmr.msra.gmra.mxu1 %vm153_vm7, %v1210_v60 }
 0x2f8   :  { %1166 = vmatpush3.msra.mxu1 %v1280_v14  ;;  %1169 = vmatprep.mubr.msk.f32.mxu1 %vm1224_vm4, %v1223_v2 }
 0x2f9   :  { %v340_v62 = vcombine.high %v339_v61, %v339_v61  ;;  %v347_v63 = vrot.slane %v339_v61, %v1324_v51  ;;  %1167 = vmatprep.subr.mxu1 %v1223_v2 }
 0x2fa   :  { %1168 = vmatpush3.msra.mxu1 %v1285_v15 }
 0x2fb   :  { %v354_v0 = vrot.slane %v340_v62, %v1324_v51  ;;  %357 = vst.msk [vmem:[#allocation2 + $0x1] sm:$0x1] %vm252_vm8, %v347_v63  ;;  %1179 = vmatprep.subr.mxu1 %v1223_v2 }
 0x2fd   :  { %358 = vst.msk [vmem:[#allocation2 + $0x9] sm:$0x1] %vm252_vm8, %v354_v0 }
 0x3b7   :  { %v431_v1 = vpop.f32.mrf.mxu1 }
 0x3b8   :  { %v432_v3 = vadd.f32 %v431_v1, %v361_v33 }
 0x3b9   :  { %v1157_v4 = vpop.f32.mrf.mxu1 }
 0x3ba   :  { %1211 = vtanh.f32 %v432_v3 }
 0x3c7   :  { %v1212_v5 = vpop.eup %1211 }
 0x3c8   :  { %v443_v6 = vrot.slane %v1212_v5, %v1324_v51  ;;  %1163 = vmatmul.mubr.msk.f32.vlgmr.msra.gmra.mxu0 %vm153_vm7, %v1212_v5 }
 0x3c9   :  { %1173 = vmatpush3.msra.mxu0 %v1280_v14  ;;  %1176 = vmatprep.mubr.msk.f32.mxu0 %vm1224_vm4, %v1223_v2 }
 0x3ca   :  { %v444_v7 = vcombine.high %v443_v6, %v443_v6  ;;  %v451_v8 = vrot.slane %v443_v6, %v1324_v51  ;;  %1174 = vmatprep.subr.mxu0 %v1223_v2 }
 0x3cb   :  { %1175 = vmatpush3.msra.mxu0 %v1285_v15 }
 0x3cc   :  { %v458_v9 = vrot.slane %v444_v7, %v1324_v51  ;;  %461 = vst.msk [vmem:[#allocation2 + $0x2] sm:$0x1] %vm252_vm8, %v451_v8  ;;  %1186 = vmatprep.subr.mxu0 %v1223_v2 }
 0x3ce   :  { %462 = vst.msk [vmem:[#allocation2 + $0xa] sm:$0x1] %vm252_vm8, %v458_v9 }
 0x488   :  { %v535_v10 = vpop.f32.mrf.mxu0 }
 0x489   :  { %v536_v11 = vadd.f32 %v535_v10, %v1303_v34 }
 0x48a   :  { %v1164_v12 = vpop.f32.mrf.mxu0 }
 0x48b   :  { %1213 = vtanh.f32 %v536_v11 }
 0x498   :  { %v1214_v13 = vpop.eup %1213 }
 0x499   :  { %v547_v16 = vrot.slane %v1214_v13, %v1324_v51  ;;  %1170 = vmatmul.mubr.msk.f32.vlgmr.msra.gmra.mxu1 %vm153_vm7, %v1214_v13 }
 0x49a   :  { %1180 = vmatpush3.msra.mxu1 %v1280_v14  ;;  %1183 = vmatprep.mubr.msk.f32.mxu1 %vm1224_vm4, %v1223_v2 }
 0x49b   :  { %v548_v17 = vcombine.high %v547_v16, %v547_v16  ;;  %v555_v18 = vrot.slane %v547_v16, %v1324_v51  ;;  %1181 = vmatprep.subr.mxu1 %v1223_v2 }
 0x49c   :  { %1182 = vmatpush3.msra.mxu1 %v1285_v15 }
 0x49d   :  { %v562_v19 = vrot.slane %v548_v17, %v1324_v51  ;;  %565 = vst.msk [vmem:[#allocation2 + $0x3] sm:$0x1] %vm252_vm8, %v555_v18 }
 0x49f   :  { %566 = vst.msk [vmem:[#allocation2 + $0xb] sm:$0x1] %vm252_vm8, %v562_v19 }
 0x559   :  { %v639_v20 = vpop.f32.mrf.mxu1 }
 0x55a   :  { %v640_v21 = vadd.f32 %v639_v20, %v1306_v35 }
 0x55b   :  { %v1171_v22 = vpop.f32.mrf.mxu1 }
 0x55c   :  { %1215 = vtanh.f32 %v640_v21 }
 0x569   :  { %v1216_v23 = vpop.eup %1215 }
 0x56a   :  { %v651_v24 = vrot.slane %v1216_v23, %v1324_v51  ;;  %1177 = vmatmul.mubr.msk.f32.vlgmr.msra.gmra.mxu0 %vm153_vm7, %v1216_v23 }
 0x56b   :  { %1187 = vmatpush3.msra.mxu0 %v1280_v14  ;;  %1190 = vmatprep.mubr.msk.f32.mxu0 %vm1224_vm4, %v1223_v2 }
 0x56c   :  { %v652_v25 = vcombine.high %v651_v24, %v651_v24  ;;  %v659_v26 = vrot.slane %v651_v24, %v1324_v51  ;;  %1188 = vmatprep.subr.mxu0 %v1223_v2 }
 0x56d   :  { %1189 = vmatpush3.msra.mxu0 %v1285_v15 }
 0x56e   :  { %v666_v27 = vrot.slane %v652_v25, %v1324_v51  ;;  %669 = vst.msk [vmem:[#allocation2 + $0x4] sm:$0x1] %vm252_vm8, %v659_v26 }
 0x570   :  { %670 = vst.msk [vmem:[#allocation2 + $0xc] sm:$0x1] %vm252_vm8, %v666_v27 }
 0x62a   :  { %v743_v28 = vpop.f32.mrf.mxu0 }
 0x62b   :  { %v744_v29 = vadd.f32 %v743_v28, %v1309_v36 }
 0x62c   :  { %v1178_v14 = vpop.f32.mrf.mxu0 }
 0x62d   :  { %1217 = vtanh.f32 %v744_v29 }
 0x63a   :  { %v1218_v30 = vpop.eup %1217 }
 0x63b   :  { %v755_v31 = vrot.slane %v1218_v30, %v1324_v51  ;;  %1184 = vmatmul.mubr.msk.f32.vlgmr.msra.gmra.mxu1 %vm153_vm7, %v1218_v30 }
 0x63d   :  { %v756_v32 = vcombine.high %v755_v31, %v755_v31  ;;  %v763_v2 = vrot.slane %v755_v31, %v1324_v51 }
 0x63f   :  { %v770_v15 = vrot.slane %v756_v32, %v1324_v51  ;;  %773 = vst.msk [vmem:[#allocation2 + $0x5] sm:$0x1] %vm252_vm8, %v763_v2 }
 0x641   :  { %774 = vst.msk [vmem:[#allocation2 + $0xd] sm:$0x1] %vm252_vm8, %v770_v15 }
 0x6fb   :  { %v847_v33 = vpop.f32.mrf.mxu1 }
 0x6fc   :  { %v848_v34 = vadd.f32 %v847_v33, %v1312_v37  ;;  %v988_v37 = vld [vmem:[%s1430_s4 + $0x8] sm:$0xff] }
 0x6fd   :  { %v1185_v35 = vpop.f32.mrf.mxu1  ;;  %1193 = vmatprep.subr.mxu1 %v988_v37 }
 0x6fe   :  { %1219 = vtanh.f32 %v848_v34  ;;  %1194 = vmatpush3.msra.mxu1 %v988_v37 }
 0x6ff   :  { %1195 = vmatprep.subr.mxu1 %v987_v42 }
 0x700   :  { %1196 = vmatpush3.msra.mxu1 %v987_v42 }
 0x70b   :  { %v1220_v36 = vpop.eup %1219 }
 0x70c   :  { %v859_v38 = vrot.slane %v1220_v36, %v1324_v51  ;;  %1191 = vmatmul.mubr.msk.f32.vlgmr.msra.gmra.mxu0 %vm153_vm7, %v1220_v36 }
 0x70e   :  { %v860_v39 = vcombine.high %v859_v38, %v859_v38  ;;  %v867_v40 = vrot.slane %v859_v38, %v1324_v51 }
 0x710   :  { %v874_v41 = vrot.slane %v860_v39, %v1324_v51  ;;  %877 = vst.msk [vmem:[#allocation2 + $0x6] sm:$0x1] %vm252_vm8, %v867_v40 }
 0x712   :  { %878 = vst.msk [vmem:[#allocation2 + $0xe] sm:$0x1] %vm252_vm8, %v874_v41 }
 0x7cc   :  { %v953_v44 = vpop.f32.mrf.mxu0 }
 0x7cd   :  { %v954_v45 = vadd.f32 %v1096_v43, %v953_v44 }
 0x7ce   :  { %v1192_v46 = vpop.f32.mrf.mxu0 }
 0x7cf   :  { %1221 = vtanh.f32 %v954_v45 }
 0x7dc   :  { %v1222_v47 = vpop.eup %1221 }
 0x7dd   :  { %v965_v48 = vrot.slane %v1222_v47, %v1324_v51 }
 0x7df   :  { %v966_v49 = vcombine.high %v965_v48, %v965_v48  ;;  %v973_v50 = vrot.slane %v965_v48, %v1324_v51 }
 0x7e1   :  { %v980_v52 = vrot.slane %v966_v49, %v1324_v51  ;;  %983 = vst.msk [vmem:[#allocation2 + $0x7] sm:$0x1] %vm252_vm8, %v973_v50 }
 0x7e3   :  { %984 = vst.msk [vmem:[#allocation2 + $0xf] sm:$0x1] %vm252_vm8, %v980_v52 }
 0x7e8   :  { %v985_v53 = vld [vmem:[#allocation2] sm:$0xff] }
 0x7e9   :  { %1197 = vmatprep.mubr.msk.f32.mxu1 %vm153_vm7, %v985_v53 }
 0x7ea   :  { %v986_v54 = vld [vmem:[#allocation2 + $0x8] sm:$0xff] }
 0x7eb   :  { %1198 = vmatmul.mubr.msk.f32.vlgmr.msra.gmra.mxu1 %vm153_vm7, %v986_v54 }
 0x8ab   :  { %v1199_v56 = vpop.f32.mrf.mxu1 }
 0x8ac   :  { %v1074_v57 = vadd.f32 %v1199_v56, %v1098_v55 }
 0x8ad   :  { %v1068_v58 = vpop.f32.mrf.mxu1 }
 0x8ae   :  { %1078 = vst.msk [vmem:[%s1433_s6 + $0x8] sm:$0xff] %vm47_vm1, %v1074_v57  ;;  %v1069_v51 = vadd.f32 %v1098_v55, %v1068_v58 }
 0x8b0   :  { %1077 = vst.msk [vmem:[%s1433_s6] sm:$0xff] %vm47_vm1, %v1069_v51 }

</bundles_post_ra>
